<compile_context>
chip_gen: v5e
topology: v5e:2x2
jax: 0.10.0
libtpu: 0.0.40
codegen_flags: <defaults>
</compile_context>

<pallas_src>
import math

import jax
import jax.numpy as jnp
from jax.experimental import pallas as pl
from jax.experimental.pallas import tpu as pltpu


def _cdiv(a, b):
    return (a + b - 1) // b


def _round_up(a, b):
    return _cdiv(a, b) * b


def _device_defaults():
    """(num_parallel_shards, vmem_cap_bytes, target_block_bytes) per TPU gen."""
    kind = ""
    try:
        kind = jax.devices()[0].device_kind.lower()
    except Exception:
        pass

    if "v7" in kind:
        # 2 TensorCores/chip, 64 MiB physical VMEM per TC, ~3.2 TB/s HBM:
        # shard rows across both cores, keep >8 MiB VMEM headroom, ~10 MiB
        # x blocks to amortise the ~0.35 us per-grid-step overhead.
        shards, cap, blk = 2, 52 * 1024 * 1024, 10 * 1024 * 1024
    elif "v6" in kind or "v5" in kind:
        # Single TensorCore, 128 MiB VMEM: no row sharding (a P axis would be
        # a serial loop), bigger blocks toward the DMA-efficiency plateau.
        shards, cap, blk = 1, 96 * 1024 * 1024, 12 * 1024 * 1024
    else:
        # Unknown generation: conservative.
        shards, cap, blk = 1, 32 * 1024 * 1024, 4 * 1024 * 1024

    # If the runtime exposes the real VMEM capacity, clamp the cap to it
    # (minus headroom for compiler-internal scratch / semaphores).
    try:
        phys = int(pltpu.get_tpu_info().vmem_capacity_bytes)
        cap = min(cap, max(16 * 1024 * 1024, phys - 8 * 1024 * 1024))
    except Exception:
        pass
    return shards, cap, blk


def _make_kernel(ts, l_dim, n_rows, kb, k_steps, p_shards):
    """Row-sum kernel for grid (P, K).

    x block:   (B, ts, L)  lane-folded spatial rows, logical block p*K + k
    out block: (1, B, L)   this shard's partial row sum (f32), resident across
                           the k (reduction) axis -> it IS the accumulator.
    """
    has_ragged = (n_rows % ts) != 0      # last real block only partially valid
    has_skip = p_shards * k_steps > kb   # rectangular-grid remainder blocks
    last_real = kb - 1

    def kernel(x_ref, o_ref):
        k = pl.program_id(1)

        @pl.when(k == 0)
        def _init():
            o_ref[...] = jnp.zeros_like(o_ref)

        def _full_sum():
            o_ref[0] += jnp.sum(x_ref[...].astype(jnp.float32), axis=1)

        def _masked_sum():
            # Rows >= n_rows of the last block are outside the array; the
            # DMA'd values there are unspecified, so zero them before summing.
            rows = last_real * ts + jax.lax.broadcasted_iota(
                jnp.int32, (ts, l_dim), 0)
            xv = jnp.where((rows < n_rows)[None, :, :],
                           x_ref[...].astype(jnp.float32), 0.0)
            o_ref[0] += jnp.sum(xv, axis=1)

        if not (has_ragged or has_skip):
            _full_sum()
        else:
            bi = pl.program_id(0) * k_steps + k   # logical row-block index

            @pl.when(bi < last_real)
            def _():
                _full_sum()

            @pl.when(bi == last_real)
            def _():
                if has_ragged:
                    _masked_sum()
                else:
                    _full_sum()
            # bi > last_real: duplicated DMA of the last real block (the
            # index_map clamps); skip so nothing is double counted.

    return kernel


def pc2dlinear_forward(x, weight, bias, *,
                       target_block_bytes=None,
                       num_parallel_shards=None,
                       vmem_cap_bytes=None):
    """x: (B, I, J, N); weight: (N, M); bias: (M,) -> (B, M) float32."""
    B, I, J, N = x.shape
    assert weight.shape[0] == N, "weight first dim must match x.shape[3]"
    M = weight.shape[1]
    S = I * J

    def_shards, def_cap, def_block = _device_defaults()
    if num_parallel_shards is None:
        num_parallel_shards = def_shards
    if vmem_cap_bytes is None:
        vmem_cap_bytes = def_cap
    if target_block_bytes is None:
        target_block_bytes = def_block

    # ---- Lane folding: fold g spatial positions into the lane axis so the
    # block's last dim L = lcm(N, 128) is lane-dense (multiple of 128).
    g = 128 // math.gcd(N, 128)
    L = g * N
    itemsize = jnp.dtype(x.dtype).itemsize
    # Packed sublane count of the input dtype: f32 -> 8, bf16 -> 16, 8b -> 32.
    sublane = {4: 8, 2: 16, 1: 32}.get(itemsize, 8)

    x_flat = x.reshape(B, S, N)
    S_fold = _round_up(S, g)
    if S_fold != S:
        # Minimal pad strictly required by the fold reshape (< g rows of N);
        # zero rows are harmless for a sum.  No row-tile padding is done.
        x_flat = jnp.pad(x_flat, ((0, 0), (0, S_fold - S), (0, 0)))
    R = S_fold // g
    x_folded = x_flat.reshape(B, R, L)

    # ---- Row-tile selection (dtype-aware sublane rounding, VMEM-fitting).
    row_bytes = B * L * itemsize
    out_block_bytes = B * L * 4
    fit_limit = max(row_bytes * sublane,
                    (vmem_cap_bytes - 2 * out_block_bytes - (4 << 20)) // 2)
    budget = min(target_block_bytes, fit_limit)
    ts = max(sublane, (budget // row_bytes) // sublane * sublane)
    if ts >= R:
        ts = R                              # single full-extent row block
    Kb = _cdiv(R, ts)                       # number of real row blocks

    P = num_parallel_shards if (num_parallel_shards > 1
                                and Kb >= num_parallel_shards) else 1
    K = _cdiv(Kb, P)                        # reduction steps per shard

    # ---- VMEM budget: 2x buffers per pipelined operand + compiler margin.
    x_block_bytes = B * ts * L * itemsize
    needed = 2 * x_block_bytes + 2 * out_block_bytes + (2 << 20)
    vmem_limit = int(min(vmem_cap_bytes, max(needed, 8 << 20)))

    cost = pl.CostEstimate(
        flops=B * R * L,                    # one add per streamed element
        transcendentals=0,
        bytes_accessed=B * R * L * itemsize + P * B * L * 4,
    )

    if P * K > Kb:
        def x_index_map(p, k):
            # Clamp logical block indices past the last real block onto it so
            # the auto-pipelined DMA never starts outside the array; the
            # kernel skips accumulation for those (p, k).
            return (0, jnp.minimum(p * K + k, Kb - 1), 0)
    else:
        def x_index_map(p, k):
            return (0, p * K + k, 0)

    kernel = _make_kernel(ts, L, R, Kb, K, P)

    partial = pl.pallas_call(
        kernel,
        out_shape=jax.ShapeDtypeStruct((P, B, L), jnp.float32),
        grid_spec=pltpu.PrefetchScalarGridSpec(
            num_scalar_prefetch=0,
            grid=(P, K),
            in_specs=[pl.BlockSpec((B, ts, L), x_index_map)],
            out_specs=pl.BlockSpec((1, B, L), lambda p, k: (p, 0, 0)),
        ),
        compiler_params=pltpu.CompilerParams(
            # Leading shard axis is "parallel" so v7x's two TensorCores each
            # stream half of the rows; k is the resident-accumulator
            # reduction axis.  (On v7x, verify TC sharding in a trace.)
            dimension_semantics=("parallel", "arbitrary"),
            vmem_limit_bytes=vmem_limit,
        ),
        cost_estimate=cost,
    )(x_folded)

    # ---- Tiny epilogue (O(B*L) work): combine shards, undo the lane fold,
    # contract against W and add the bias once.
    row_sum = partial[0] if P == 1 else partial.sum(axis=0)     # (B, L)
    feat_sum = row_sum.reshape(B, g, N).sum(axis=1)             # (B, N)
    return feat_sum @ weight.astype(jnp.float32) + bias.astype(jnp.float32)


def init_params(key, input_features, out_channels):
    """Deterministic xavier_uniform_ weight + zero bias (matches __init__)."""
    bound = jnp.sqrt(6.0 / (input_features + out_channels))
    weight = jax.random.uniform(
        key, (input_features, out_channels),
        minval=-bound, maxval=bound, dtype=jnp.float32)
    bias = jnp.zeros((out_channels,), dtype=jnp.float32)
    return weight, bias


def _reference(x, weight, bias):
    # f32 stand-in for torch's f64 einsum (see TODO at top of file).
    return jnp.einsum('bijn,nm->bm', x, weight) + bias


if __name__ == "__main__":
    key = jax.random.PRNGKey(0)
    k_x1, k_x2, k_w = jax.random.split(key, 3)

    input_features = 6     # matches the module default
    out_channels = 8
    weight, bias = init_params(k_w, input_features, out_channels)

    # --- Case 1: module-default sized input (single block, K = 1, P = 1). ---
    B, I, J = 2, 16, 16
    x1 = jax.random.normal(k_x1, (B, I, J, input_features), dtype=jnp.float32)
    out1 = jax.block_until_ready(pc2dlinear_forward(x1, weight, bias))
    ref1 = _reference(x1, weight, bias)
    assert out1.shape == (B, out_channels)
    assert jnp.allclose(out1, ref1, atol=1e-4, rtol=1e-4), "case-1 mismatch"

    # --- Case 2: stress the reduction / sharding paths: K > 1 accumulation,
    # P = 2 shards, a fold remainder (S % g != 0), an in-kernel masked ragged
    # row tail, and a clamped/skipped rectangular-grid remainder block. ---
    B2, I2, J2 = 2, 30, 40          # S = 1200, g = 64 -> 19 folded rows
    x2 = jax.random.normal(k_x2, (B2, I2, J2, input_features),
                           dtype=jnp.float32)
    out2 = jax.block_until_ready(
        pc2dlinear_forward(x2, weight, bias,
                           target_block_bytes=1,       # force tiny 8-row tiles
                           num_parallel_shards=2))
    ref2 = _reference(x2, weight, bias)
    assert out2.shape == (B2, out_channels)
    assert jnp.allclose(out2, ref2, atol=1e-3, rtol=1e-4), "case-2 mismatch"

    print("KERNEL_OK")
</pallas_src>

<mosaic_0001>
module attributes {stable_mosaic.version = 11 : i64} {
  func.func @kernel(%arg0: i32, %arg1: i32, %arg2: memref<2x4x384xf32, #tpu.memory_space<vmem>>, %arg3: memref<1x2x384xf32, #tpu.memory_space<vmem>>) attributes {dimension_semantics = [#tpu.dimension_semantics<parallel>, #tpu.dimension_semantics<arbitrary>], iteration_bounds = array<i64: 1, 1>, scalar_prefetch = 0 : i64, scratch_operands = 0 : i64, tpu.core_type = #tpu.core_type<tc>, window_params = [{transform_indices = @transform_0, window_bounds = array<i64: 2, 4, 384>}, {transform_indices = @transform_1, window_bounds = array<i64: 1, 2, 384>}]} {
    %c0_i32 = arith.constant 0 : i32
    %0 = arith.cmpi eq, %arg1, %c0_i32 : i32
    %1 = arith.extui %0 : i1 to i32
    %c0_i32_0 = arith.constant 0 : i32
    %2 = arith.cmpi ne, %1, %c0_i32_0 : i32
    scf.if %2 {
      %cst_9 = arith.constant 0.000000e+00 : f32
      %11 = vector.broadcast %cst_9 : f32 to vector<1x2x384xf32>
      %c0_10 = arith.constant 0 : index
      %c0_11 = arith.constant 0 : index
      %c0_12 = arith.constant 0 : index
      %12 = vector.load %arg3[%c0_10, %c0_11, %c0_12] : memref<1x2x384xf32, #tpu.memory_space<vmem>>, vector<1x2x384xf32>
      tpu.vector_store %arg3[%c0_10, %c0_11, %c0_12], %11 {strides = array<i32>} : memref<1x2x384xf32, #tpu.memory_space<vmem>>, vector<1x2x384xf32>,
    } else {
    }
    %c0 = arith.constant 0 : index
    %c0_1 = arith.constant 0 : index
    %c0_2 = arith.constant 0 : index
    %3 = vector.load %arg3[%c0, %c0_1, %c0_2] : memref<1x2x384xf32, #tpu.memory_space<vmem>>, vector<1x2x384xf32>
    %4 = vector.shape_cast %3 : vector<1x2x384xf32> to vector<2x384xf32>
    %c0_3 = arith.constant 0 : index
    %c0_4 = arith.constant 0 : index
    %c0_5 = arith.constant 0 : index
    %5 = vector.load %arg2[%c0_3, %c0_4, %c0_5] : memref<2x4x384xf32, #tpu.memory_space<vmem>>, vector<2x4x384xf32>
    %cst = arith.constant dense<0.000000e+00> : vector<2x384xf32>
    %6 = vector.multi_reduction <add>, %5, %cst [1] : vector<2x4x384xf32> to vector<2x384xf32>
    %7 = arith.addf %4, %6 : vector<2x384xf32>
    %c0_6 = arith.constant 0 : index
    %c0_7 = arith.constant 0 : index
    %c0_8 = arith.constant 0 : index
    %8 = vector.load %arg3[%c0_6, %c0_7, %c0_8] : memref<1x2x384xf32, #tpu.memory_space<vmem>>, vector<1x2x384xf32>
    %9 = vector.shape_cast %8 : vector<1x2x384xf32> to vector<2x384xf32>
    %10 = vector.shape_cast %7 : vector<2x384xf32> to vector<1x2x384xf32>
    tpu.vector_store %arg3[%c0_6, %c0_7, %c0_8], %10 {strides = array<i32>} : memref<1x2x384xf32, #tpu.memory_space<vmem>>, vector<1x2x384xf32>,
    return
  }
  func.func @transform_0(%arg0: i32, %arg1: i32) -> (i32, i32, i32) {
    %c1_i32 = arith.constant 1 : i32
    %0 = arith.muli %arg0, %c1_i32 : i32
    %1 = arith.addi %0, %arg1 : i32
    %c0_i32 = arith.constant 0 : i32
    %c0_i32_0 = arith.constant 0 : i32
    %c0_i32_1 = arith.constant 0 : i32
    return %c0_i32, %1, %c0_i32_0 : i32, i32, i32
  }
  func.func @transform_1(%arg0: i32, %arg1: i32) -> (i32, i32, i32) {
    %c0_i32 = arith.constant 0 : i32
    %c0_i32_0 = arith.constant 0 : i32
    %c0_i32_1 = arith.constant 0 : i32
    return %arg0, %c0_i32, %c0_i32_0 : i32, i32, i32
  }
}

</mosaic_0001>

<bundles_post_ra>
// kernel: tpu_custom_call.1
= control target key start
LH: loop header
LB: loop body
LE: loop exit
PB: predicated region body
PF: predicated region fallthrough
CT: control target
= control target key end

     0   :  { %6 = vsyncpa [#allocation3], 0  ;;  %s240_s0 = inlined_call_operand.hbm [shape: f32[2,4,384], index: 0, kind: input, shape index: {}]   ;;  %s241_s1 = inlined_call_operand.hbm [shape: f32[1,2,384], index: 1, kind: output, shape index: {}]  }
   0x1   :  { %7 = vsyncpa [#allocation4], 0  ;;  %s16_s8 = sshll.u32 %s240_s0, 4  ;;  %s211_s9 = smov [#allocation2]   ;;  %s17_s8 = int_to_ptr.hbm [resolvable:$true] %s16_s8 }
   0x2   :  { %s18_s10 = sshll.u32 %s211_s9, 4  ;;  %s212_s11 = smov 192   ;;  %s19_s10 = int_to_ptr.vmem [resolvable:$true] %s18_s10 }
   0x3   :  { %s213_s12 = smov 12  }
   0x4   :  { %24 = dma.hbm_to_vmem [thread:$0]  %s17_s8, 384, %s19_s10, [#allocation3], %s212_s11, %s212_s11, %s213_s12  }
   0x5   :  { %207 = dma.done.wait [#allocation3], 384  }
   0x6   :  { %208 = vsyncadd [#allocation3], 4294966912  ;;  %v214_v0 = vmov 0.0   ;;  %v36_v1 = vld [vmem:[#allocation2] sm:$0xff]  ;;  %v37_v2 = vld [vmem:[#allocation2 + $0x8] sm:$0xf] }
   0x7   :  { %34 = vst [vmem:[#allocation5] sm:$0x3f] %v214_v0  ;;  %v38_v3 = vld [vmem:[#allocation2 + $0xc] sm:$0xff]  ;;  %v39_v4 = vld [vmem:[#allocation2 + $0x14] sm:$0xf]  ;;  %vm63_vm0 = vcmask 1043456  }
   0x8   :  { %44 = vst [vmem:[#allocation1] ss:$2 sm:$0xff] %v36_v1  ;;  %vm116_vm1 = vcmask 1041408   ;;  %vm126_vm2 = vcmask 1041409   ;;  %vm128_vm3 = vcmask 1043459   ;;  %vm130_vm4 = vcmask 1045509  }
   0x9   :  { %46 = vst [vmem:[#allocation1 + $0x10] ss:$2 sm:$0xff] %v37_v2  ;;  %vm132_vm5 = vcmask 1047559   ;;  %s215_s0 = smov [#allocation5]   ;;  %s144_s16 = sshll.u32 %s241_s1, 4  ;;  %s145_s16 = int_to_ptr.hbm [resolvable:$true] %s144_s16 }
   0xa   :  { %51 = vst [vmem:[#allocation1 + $0x20] ss:$2 sm:$0xff] %v38_v3  ;;  %s142_s13 = sshll.u32 %s215_s0, 4  ;;  %s143_s13 = int_to_ptr.vmem [resolvable:$true] %s142_s13 }
   0xb   :  { %53 = vst [vmem:[#allocation1 + $0x30] ss:$2 sm:$0xff] %v39_v4 }
   0xe   :  { %v35_v63 = vld [vmem:[#allocation5] sm:$0x3f] }
   0xf   :  { %v47_v5 = vld.sshfl [vmem:[#allocation1] sm:$0xff pattern:$0x75316420]  ;;  %v48_v6 = vld.sshfl [vmem:[#allocation1 + $0x8] sm:$0xff pattern:$0x75316420] }
  0x10   :  { %v49_v7 = vld.sshfl [vmem:[#allocation1 + $0x10] sm:$0xff pattern:$0x75316420]  ;;  %v64_v8 = vsel %vm63_vm0, %v47_v5, 0.0  ;;  %v71_v9 = vsel %vm63_vm0, %v48_v6, 0.0 }
  0x11   :  { %v54_v10 = vld.sshfl [vmem:[#allocation1 + $0x20] sm:$0xff pattern:$0x75316420]  ;;  %v55_v11 = vld.sshfl [vmem:[#allocation1 + $0x28] sm:$0xff pattern:$0x75316420] }
  0x12   :  { %v56_v12 = vld.sshfl [vmem:[#allocation1 + $0x30] sm:$0xff pattern:$0x75316420]  ;;  %v65_v13 = vrot.slane %v64_v8, 4  ;;  %v72_v14 = vrot.slane %v71_v9, 4  ;;  %v78_v15 = vsel %vm63_vm0, %v49_v7, 0.0 }
  0x13   :  { %v79_v16 = vrot.slane %v78_v15, 4  ;;  %v85_v17 = vsel %vm63_vm0, %v54_v10, 0.0  ;;  %v92_v18 = vsel %vm63_vm0, %v55_v11, 0.0  ;;  %v99_v19 = vsel %vm63_vm0, %v56_v12, 0.0 }
  0x14   :  { %v66_v20 = vadd.f32 %v65_v13, %v64_v8  ;;  %v73_v21 = vadd.f32 %v72_v14, %v71_v9  ;;  %v86_v22 = vrot.slane %v85_v17, 4  ;;  %v93_v23 = vrot.slane %v92_v18, 4 }
  0x15   :  { %v80_v24 = vadd.f32 %v79_v16, %v78_v15  ;;  %v100_v25 = vrot.slane %v99_v19, 4 }
  0x16   :  { %v67_v26 = vrot.slane %v66_v20, 2  ;;  %v74_v27 = vrot.slane %v73_v21, 2  ;;  %v87_v28 = vadd.f32 %v86_v22, %v85_v17  ;;  %v94_v29 = vadd.f32 %v93_v23, %v92_v18 }
  0x17   :  { %v81_v30 = vrot.slane %v80_v24, 2  ;;  %v101_v31 = vadd.f32 %v100_v25, %v99_v19 }
  0x18   :  { %v68_v32 = vadd.f32 %v67_v26, %v66_v20  ;;  %v75_v33 = vadd.f32 %v74_v27, %v73_v21  ;;  %v88_v34 = vrot.slane %v87_v28, 2  ;;  %v95_v35 = vrot.slane %v94_v29, 2 }
  0x19   :  { %v82_v36 = vadd.f32 %v81_v30, %v80_v24  ;;  %v102_v37 = vrot.slane %v101_v31, 2 }
  0x1a   :  { %v76_v38 = vrot.slane %v75_v33, 1  ;;  %v89_v39 = vadd.f32 %v88_v34, %v87_v28  ;;  %v96_v40 = vadd.f32 %v95_v35, %v94_v29  ;;  %v69_v43 = vrot.slane %v68_v32, 1 }
  0x1b   :  { %v83_v41 = vrot.slane %v82_v36, 1  ;;  %v103_v42 = vadd.f32 %v102_v37, %v101_v31 }
  0x1c   :  { %v77_v44 = vadd.f32 %v76_v38, %v75_v33  ;;  %v90_v45 = vrot.slane %v89_v39, 1  ;;  %v97_v46 = vrot.slane %v96_v40, 1  ;;  %v70_v52 = vadd.f32 %v69_v43, %v68_v32 }
  0x1d   :  { %v84_v47 = vadd.f32 %v83_v41, %v82_v36  ;;  %v104_v48 = vrot.slane %v103_v42, 1 }
  0x1e   :  { %v98_v49 = vadd.f32 %v97_v46, %v96_v40  ;;  %v112_v50 = vrot.slane %v77_v44, 6  ;;  %v91_v53 = vadd.f32 %v90_v45, %v89_v39 }
  0x1f   :  { %v105_v51 = vadd.f32 %v104_v48, %v103_v42  ;;  %v113_v55 = vrot.slane %v84_v47, 4 }
  0x20   :  { %v114_v54 = vrot.slane %v98_v49, 6  ;;  %v117_v57 = vsel %vm116_vm1, %v70_v52, %v112_v50 }
  0x21   :  { %v115_v56 = vrot.slane %v105_v51, 4  ;;  %v118_v61 = vsel %vm63_vm0, %v117_v57, %v113_v55 }
  0x22   :  { %v119_v58 = vsel %vm116_vm1, %v91_v53, %v114_v54 }
  0x23   :  { %v120_v59 = vsel %vm63_vm0, %v119_v58, %v115_v56 }
  0x24   :  { %v125_v60 = vrot.slane %v120_v59, 7 }
  0x26   :  { %v127_v62 = vsel %vm126_vm2, %v125_v60, %v118_v61 }
  0x27   :  { %v129_v0 = vsel %vm128_vm3, %v125_v60, %v127_v62 }
  0x28   :  { %v131_v1 = vsel %vm130_vm4, %v125_v60, %v129_v0 }
  0x29   :  { %v133_v2 = vsel %vm132_vm5, %v125_v60, %v131_v1 }
  0x2a   :  { %v135_v3 = vadd.f32 %v133_v2, %v35_v63 }
  0x2c   :  { %136 = vst [vmem:[#allocation5] sm:$0x3f] %v135_v3 }
  0x2d   :  { %147 = dma.vmem_to_hbm [thread:$0]  %s143_s13, 96, %s145_s16, [#allocation4]  }
  0x2e   :  { %209 = dma.done.wait [#allocation4], 96  }
  0x2f   :  { %210 = vsyncadd [#allocation4], 4294967200 }
  0x30   :  { %152 = vsyncpa [#allocation3], 1 }
  0x31   :  { %153 = vsyncpa [#allocation4], 1 }

</bundles_post_ra>
